<compile_context>
chip_gen: v7x
topology: tpu7x:2x2x1
jax: 0.10.0
libtpu: 0.0.40
codegen_flags: <defaults>
</compile_context>

<pallas_src>
import functools

import jax
import jax.numpy as jnp
from jax.experimental import pallas as pl
from jax.experimental.pallas import tpu as pltpu


def _pixelnorm_kernel(x_ref, o_ref, *, inv_c, eps):
    # x_ref / o_ref: (nb, C, T) block in VMEM; channels on sublanes, spatial on lanes.
    x = x_ref[...].astype(jnp.float32)
    # mean over channels = sum * (1/C)  (per (batch, lane) column; garbage in
    # padded lanes/batches stays confined there and those stores are masked).
    mean_sq = jnp.sum(x * x, axis=1, keepdims=True) * inv_c
    scale = jax.lax.rsqrt(mean_sq + eps)  # rsqrt lands on the EUP slot
    o_ref[...] = (x * scale).astype(o_ref.dtype)


def _choose_hw_tile(hw, c, itemsize, target_block_bytes):
    """Lane tile: full H*W if it fits, else a multiple of 128 that (preferably)
    divides H*W so there is no ragged, masked final block."""
    max_lanes = max(128, target_block_bytes // max(1, c * itemsize))
    if hw <= max_lanes:
        # Full spatial extent in one block (always legal: equals the array dim).
        return hw
    max_tile = (max_lanes // 128) * 128
    # Prefer a 128-multiple that divides hw -> unmasked stores on every step.
    for tile in range(max_tile, 0, -128):
        if hw % tile == 0:
            return tile
    # Fall back: largest 128-multiple; ragged last block handled by Pallas
    # OOB-masking (lane-local, so padded-lane garbage can't contaminate output).
    return max_tile


def _choose_batch_fold(n, c, hw, hw_tile, itemsize, target_block_bytes,
                       min_split_bytes=1024 * 1024):
    """Fold nb batch elements per block when the full spatial extent fits in one
    lane tile. Prefer nb that divides n; keep >=2 grid steps for large tensors
    so v7x's two TensorCores both get work."""
    if hw_tile != hw:
        return 1  # spatial axis is already tiled; keep one batch per block
    per_batch_bytes = c * hw * itemsize
    nb = max(1, min(n, target_block_bytes // max(1, per_batch_bytes)))
    for cand in range(nb, 0, -1):  # prefer an exact divisor of n
        if n % cand == 0:
            nb = cand
            break
    # Don't collapse a *large* tensor to a single grid step: leave >=2 steps so
    # the parallel axis can shard across TensorCores (v7x). For tiny tensors
    # (test-sized layers) one step is cheapest, so only split when each half is
    # still comfortably above the per-step-overhead regime.
    if nb == n and n >= 2 and nb * per_batch_bytes >= 2 * min_split_bytes:
        nb = -(-n // 2)  # ceil(n/2) -> 2 roughly even steps
    return nb


def pixel_norm(x, dim=1, eps=1e-8, *, target_block_bytes=4 * 1024 * 1024):
    """Pixel norm over the channel dim of an NCHW tensor (dim=1, as in the module)."""
    assert dim == 1, "This Pallas implementation targets channel-dim (dim=1) normalization."
    n, c, h, w = x.shape
    hw = h * w

    # Free reshape — stays in native NCHW memory order, no extra HBM traffic.
    x3d = x.reshape(n, c, hw)

    itemsize = jnp.dtype(x.dtype).itemsize
    hw_tile = _choose_hw_tile(hw, c, itemsize, target_block_bytes)
    nb = _choose_batch_fold(n, c, hw, hw_tile, itemsize, target_block_bytes)
    grid = (pl.cdiv(n, nb), pl.cdiv(hw, hw_tile))

    out3d = pl.pallas_call(
        functools.partial(_pixelnorm_kernel, inv_c=1.0 / c, eps=float(eps)),
        out_shape=jax.ShapeDtypeStruct((n, c, hw), x.dtype),
        grid_spec=pltpu.PrefetchScalarGridSpec(
            num_scalar_prefetch=0,
            grid=grid,
            in_specs=[pl.BlockSpec((nb, c, hw_tile), lambda i, t: (i, 0, t))],
            out_specs=pl.BlockSpec((nb, c, hw_tile), lambda i, t: (i, 0, t)),
        ),
        compiler_params=pltpu.CompilerParams(
            # Both axes independent -> shard across TensorCores (v7x megacore);
            # no-op on single-TC v5e/v6e.
            dimension_semantics=("parallel", "parallel"),
            # ~4 MiB blocks * (2 in + 2 out buffers) ~= 16 MiB resident (+ f32
            # temp for bf16 inputs); 48 MiB cap is safe on v5e/v6e (128 MiB)
            # and v7x (64 MiB) while lifting the smaller scoped defaults.
            vmem_limit_bytes=48 * 1024 * 1024,
        ),
    )(x3d)

    # Free reshape back to NCHW.
    return out3d.reshape(n, c, h, w)


def pixel_norm_reference(x, dim=1, eps=1e-8):
    scale = jax.lax.rsqrt(jnp.mean(jnp.square(x), axis=dim, keepdims=True) + eps)
    return x * scale


if __name__ == "__main__":
    key = jax.random.PRNGKey(0)

    # 1) Module-consistent small NCHW shape: exercises the batch-folded,
    #    single-lane-tile path (nb=2, one grid step).
    x1 = jax.random.normal(key, (2, 4, 16, 16), dtype=jnp.float32)
    out1 = jax.block_until_ready(pixel_norm(x1, dim=1, eps=1e-8))
    ref1 = pixel_norm_reference(x1, dim=1, eps=1e-8)
    assert out1.shape == x1.shape and out1.dtype == x1.dtype
    assert jnp.allclose(out1, ref1, atol=1e-5, rtol=1e-5), "mismatch vs reference (case 1)"

    # 2) Ragged-spatial case: force hw tiling (hw=576 with a 128-lane tile) so
    #    the masked final-block path is exercised and verified.
    key2 = jax.random.PRNGKey(0)
    x2 = jax.random.normal(key2, (3, 8, 24, 24), dtype=jnp.float32)
    out2 = jax.block_until_ready(pixel_norm(x2, dim=1, eps=1e-8, target_block_bytes=4096))
    ref2 = pixel_norm_reference(x2, dim=1, eps=1e-8)
    assert out2.shape == x2.shape and out2.dtype == x2.dtype
    assert jnp.allclose(out2, ref2, atol=1e-5, rtol=1e-5), "mismatch vs reference (case 2)"

    print("KERNEL_OK")
</pallas_src>

<mosaic_0001>
module attributes {stable_mosaic.version = 11 : i64} {
  func.func @_pixelnorm_kernel(%arg0: i32, %arg1: i32, %arg2: memref<2x4x256xf32, #tpu.memory_space<vmem>>, %arg3: memref<2x4x256xf32, #tpu.memory_space<vmem>>) attributes {dimension_semantics = [#tpu.dimension_semantics<parallel>, #tpu.dimension_semantics<parallel>], iteration_bounds = array<i64: 1, 1>, scalar_prefetch = 0 : i64, scratch_operands = 0 : i64, tpu.core_type = #tpu.core_type<tc>, window_params = [{transform_indices = @transform_0, window_bounds = array<i64: 2, 4, 256>}, {transform_indices = @transform_1, window_bounds = array<i64: 2, 4, 256>}]} {
    %c0 = arith.constant 0 : index
    %c0_0 = arith.constant 0 : index
    %c0_1 = arith.constant 0 : index
    %0 = vector.load %arg2[%c0, %c0_0, %c0_1] : memref<2x4x256xf32, #tpu.memory_space<vmem>>, vector<2x4x256xf32>
    %1 = arith.mulf %0, %0 : vector<2x4x256xf32>
    %cst = arith.constant dense<0.000000e+00> : vector<2x256xf32>
    %2 = vector.multi_reduction <add>, %1, %cst [1] : vector<2x4x256xf32> to vector<2x256xf32>
    %3 = vector.shape_cast %2 : vector<2x256xf32> to vector<2x1x256xf32>
    %cst_2 = arith.constant 2.500000e-01 : f32
    %4 = vector.broadcast %cst_2 : f32 to vector<2x1x256xf32>
    %5 = arith.mulf %3, %4 : vector<2x1x256xf32>
    %cst_3 = arith.constant 9.99999993E-9 : f32
    %6 = vector.broadcast %cst_3 : f32 to vector<2x1x256xf32>
    %7 = arith.addf %5, %6 : vector<2x1x256xf32>
    %8 = math.rsqrt %7 : vector<2x1x256xf32>
    %9 = vector.broadcast %8 : vector<2x1x256xf32> to vector<2x4x256xf32>
    %10 = arith.mulf %0, %9 : vector<2x4x256xf32>
    %c0_4 = arith.constant 0 : index
    %c0_5 = arith.constant 0 : index
    %c0_6 = arith.constant 0 : index
    %11 = vector.load %arg3[%c0_4, %c0_5, %c0_6] : memref<2x4x256xf32, #tpu.memory_space<vmem>>, vector<2x4x256xf32>
    tpu.vector_store %arg3[%c0_4, %c0_5, %c0_6], %10 {strides = array<i32>} : memref<2x4x256xf32, #tpu.memory_space<vmem>>, vector<2x4x256xf32>,
    return
  }
  func.func @transform_0(%arg0: i32, %arg1: i32) -> (i32, i32, i32) {
    %c0_i32 = arith.constant 0 : i32
    %c0_i32_0 = arith.constant 0 : i32
    return %arg0, %c0_i32, %arg1 : i32, i32, i32
  }
  func.func @transform_1(%arg0: i32, %arg1: i32) -> (i32, i32, i32) {
    %c0_i32 = arith.constant 0 : i32
    %c0_i32_0 = arith.constant 0 : i32
    return %arg0, %c0_i32, %arg1 : i32, i32, i32
  }
}

</mosaic_0001>

<bundles_post_ra>
// kernel: tpu_custom_call.1
= control target key start
LH: loop header
LB: loop body
LE: loop exit
PB: predicated region body
PF: predicated region fallthrough
CT: control target
= control target key end

     0   :  { %6 = vsyncpa [#allocation3], 0  ;;  %s207_s0 = inlined_call_operand.hbm [shape: f32[2,4,256], index: 0, kind: input, shape index: {}]   ;;  %s208_s1 = inlined_call_operand.hbm [shape: f32[2,4,256], index: 1, kind: output, shape index: {}]  }
   0x1   :  { %7 = vsyncpa [#allocation4], 0  ;;  %s163_s6 = smov [#allocation2]   ;;  %s115_s10 = scalar_lea.hbm %s207_s0, 256 }
   0x2   :  { %s13_s7 = sshll.u32 %s163_s6, 4  ;;  %p116_p0 = scmp.ne.s32.totalorder %s207_s0, %s115_s10  ;;  %s14_s7 = int_to_ptr.vmem [resolvable:$true] %s13_s7 }
   0x3   :  { %p119_p1 = scmp.lt.u32.totalorder %s115_s10, %s207_s0 }
   0x5   :  { %p121_p2 = pnand %p119_p1, %p116_p0 }
   0x7   :  { %124 = shalt.err (!%p121_p2)
}
   0x8   :  { %s125_s15 = scalar_lea.vmem %s14_s7, 256  ;;  %p130_p4 = scmp.lt.s32.totalorder %s14_s7, %s14_s7 }
   0x9   :  { %p126_p3 = scmp.ne.s32.totalorder %s14_s7, %s125_s15  ;;  %p131_p5 = scmp.lt.s32.totalorder %s125_s15, %s125_s15 }
   0xb   :  { %p132_p6 = por %p131_p5, %p130_p4 }
   0xd   :  { %p133_p7 = pnand %p132_p6, %p126_p3 }
   0xf   :  { %136 = shalt.err (!%p133_p7)
}
  0x10   :  { %s164_s16 = smov 128   ;;  %s165_s17 = smov 8  }
  0x11   :  { %19 = dma.hbm_to_vmem [thread:$0]  %s207_s0, 256, %s14_s7, [#allocation3], %s164_s16, %s164_s16, %s165_s17  }
  0x12   :  { %159 = dma.done.wait [#allocation3], 256  }
  0x13   :  { %160 = vsyncadd [#allocation3], 4294967040  ;;  %v23_v0 = vld [vmem:[#allocation2] sm:$0xff]  ;;  %vm33_vm0 = vcmask 1043456   ;;  %v24_v1 = vld [vmem:[#allocation2 + $0x8] sm:$0xff]  ;;  %s166_s0 = smov [#allocation5]  }
  0x14   :  { %v25_v2 = vmul.f32 %v23_v0, %v23_v0  ;;  %v26_v3 = vmul.f32 %v24_v1, %v24_v1  ;;  %s91_s20 = sshll.u32 %s166_s0, 4  ;;  %s92_s20 = int_to_ptr.vmem [resolvable:$true] %s91_s20 }
  0x15   :  { %s137_s21 = scalar_lea.vmem %s92_s20, 256  ;;  %p142_p9 = scmp.lt.s32.totalorder %s92_s20, %s92_s20 }
  0x16   :  { %v29_v4 = vcombine.high %v25_v2, %v25_v2  ;;  %v34_v5 = vsel %vm33_vm0, %v25_v2, 0.0  ;;  %v30_v6 = vcombine.high %v26_v3, %v26_v3  ;;  %v48_v7 = vsel %vm33_vm0, %v26_v3, 0.0  ;;  %p138_p8 = scmp.ne.s32.totalorder %s92_s20, %s137_s21  ;;  %p143_p10 = scmp.lt.s32.totalorder %s137_s21, %s137_s21 }
  0x17   :  { %v35_v8 = vrot.slane %v34_v5, 4  ;;  %v49_v9 = vrot.slane %v48_v7, 4 }
  0x18   :  { %v41_v10 = vsel %vm33_vm0, %v29_v4, 0.0  ;;  %v55_v11 = vsel %vm33_vm0, %v30_v6, 0.0  ;;  %p144_p11 = por %p143_p10, %p142_p9 }
  0x19   :  { %v36_v12 = vadd.f32 %v35_v8, %v34_v5  ;;  %v42_v13 = vrot.slane %v41_v10, 4  ;;  %v50_v14 = vadd.f32 %v49_v9, %v48_v7  ;;  %v56_v15 = vrot.slane %v55_v11, 4 }
  0x1a   :  { %p145_p12 = pnand %p144_p11, %p138_p8 }
  0x1b   :  { %v37_v16 = vrot.slane %v36_v12, 2  ;;  %v43_v17 = vadd.f32 %v42_v13, %v41_v10  ;;  %v51_v18 = vrot.slane %v50_v14, 2  ;;  %v57_v19 = vadd.f32 %v56_v15, %v55_v11 }
  0x1d   :  { %v38_v20 = vadd.f32 %v37_v16, %v36_v12  ;;  %v44_v21 = vrot.slane %v43_v17, 2  ;;  %v52_v22 = vadd.f32 %v51_v18, %v50_v14  ;;  %v58_v23 = vrot.slane %v57_v19, 2 }
  0x1f   :  { %v39_v24 = vrot.slane %v38_v20, 1  ;;  %v45_v25 = vadd.f32 %v44_v21, %v43_v17  ;;  %v53_v26 = vrot.slane %v52_v22, 1  ;;  %v59_v27 = vadd.f32 %v58_v23, %v57_v19 }
  0x21   :  { %v40_v28 = vadd.f32 %v39_v24, %v38_v20  ;;  %v46_v29 = vrot.slane %v45_v25, 1  ;;  %v54_v30 = vadd.f32 %v53_v26, %v52_v22  ;;  %v60_v31 = vrot.slane %v59_v27, 1 }
  0x23   :  { %v47_v32 = vadd.f32 %v46_v29, %v45_v25  ;;  %v62_v33 = vmul.f32 0.25, %v40_v28  ;;  %v61_v34 = vadd.f32 %v60_v31, %v59_v27  ;;  %v64_v35 = vmul.f32 0.25, %v54_v30 }
  0x25   :  { %v63_v36 = vmul.f32 0.25, %v47_v32  ;;  %v66_v37 = vadd.f32 1e-08, %v62_v33  ;;  %v65_v38 = vmul.f32 0.25, %v61_v34  ;;  %v68_v39 = vadd.f32 1e-08, %v64_v35 }
  0x27   :  { %v67_v40 = vadd.f32 1e-08, %v63_v36  ;;  %107 = vrsqrt.f32 %v66_v37  ;;  %v69_v41 = vadd.f32 1e-08, %v65_v38 }
  0x28   :  { %109 = vrsqrt.f32 %v68_v39 }
  0x29   :  { %111 = vrsqrt.f32 %v67_v40 }
  0x2a   :  { %113 = vrsqrt.f32 %v69_v41 }
  0x31   :  { %v108_v42 = vpop.eup %107 }
  0x32   :  { %v110_v43 = vpop.eup %109 }
  0x33   :  { %v112_v44 = vpop.eup %111 }
  0x34   :  { %v114_v45 = vpop.eup %113  ;;  %v78_v46 = vcombine.low %v108_v42, %v112_v44 }
  0x35   :  { %v79_v47 = vcombine.low %v110_v43, %v114_v45 }
  0x36   :  { %v82_v48 = vmul.f32 %v78_v46, %v23_v0 }
  0x37   :  { %v83_v49 = vmul.f32 %v79_v47, %v24_v1 }
  0x38   :  { %84 = vst [vmem:[#allocation5] sm:$0xff] %v82_v48 }
  0x39   :  { %85 = vst [vmem:[#allocation5 + $0x8] sm:$0xff] %v83_v49 }
  0x3a   :  { %148 = shalt.err (!%p145_p12)
}
  0x3b   :  { %s149_s24 = scalar_lea.hbm %s208_s1, 256 }
  0x3c   :  { %p150_p13 = scmp.ne.s32.totalorder %s208_s1, %s149_s24  ;;  %p153_p0 = scmp.lt.u32.totalorder %s149_s24, %s208_s1 }
  0x3e   :  { %p155_p1 = pnand %p153_p0, %p150_p13 }
  0x40   :  { %158 = shalt.err (!%p155_p1)
}
  0x41   :  { %97 = dma.vmem_to_hbm [thread:$0]  %s92_s20, 256, %s208_s1, [#allocation4], %s164_s16, %s164_s16, %s165_s17  }
  0x42   :  { %161 = dma.done.wait [#allocation4], 256  }
  0x43   :  { %162 = vsyncadd [#allocation4], 4294967040 }
  0x44   :  { %101 = vsyncpa [#allocation3], 1 }
  0x45   :  { %102 = vsyncpa [#allocation4], 1 }

</bundles_post_ra>
